<compile_context>
chip_gen: v5e
topology: v5e:2x2
jax: 0.10.0
libtpu: 0.0.40
codegen_flags: <defaults>
</compile_context>

<pallas_src>
import functools

import jax
import jax.numpy as jnp
import numpy as np
from jax import lax
from jax.experimental import pallas as pl
from jax.experimental.pallas import tpu as pltpu


# ----------------------------- Pallas kernels -----------------------------

def _bn_kernel(v_ref, g_ref, b_ref, y_ref, *, count):
    """Fused BatchNorm2d(1) forward (batch stats): stats + affine in one body.

    The whole response map is one VMEM block, so we do a stable two-pass
    mean/variance and apply the affine in place — one HBM read, one write.
    """
    v = v_ref[...].astype(jnp.float32)
    mean = jnp.sum(v) * (1.0 / count)
    d = v - mean
    var = jnp.sum(d * d) * (1.0 / count)          # biased, matches torch training BN
    scale = g_ref[0] / jnp.sqrt(var + 1e-5)
    y_ref[...] = (d * scale + b_ref[0]).astype(y_ref.dtype)


def _affine_kernel(v_ref, w_ref, b_ref, y_ref):
    """'linear' mode: 1x1 conv == scalar FMA applied directly to the response map."""
    y_ref[...] = (v_ref[...].astype(jnp.float32) * w_ref[0] + b_ref[0]).astype(y_ref.dtype)


def _norm_kernel(o_ref, z_ref, x_ref, w_ref, y_ref, *, mode):
    """cosine / euclidean normalization on lane-dense views.

    o_ref: (nb, 1, Q)   flattened response,    Q  = Ho*Wo
    z_ref: (nb, 1, Kz)  flattened template,    Kz = C*k*k
    x_ref: (nb, C, P)   flattened search,      P  = Hx*Wx   (lane axis = P)
    w_ref: (P, Q)       constant 0/1 window matrix: the k x k VALID sliding-window
                        sum becomes one MXU matmul (no XLU rotate chains).
    """
    o = o_ref[...][:, 0, :].astype(jnp.float32)            # (nb, Q)
    zz = z_ref[...][:, 0, :].astype(jnp.float32)           # (nb, Kz)
    xx = x_ref[...].astype(jnp.float32)                    # (nb, C, P)
    wmat = w_ref[...]                                      # (P, Q)

    sz = jnp.sum(zz * zz, axis=-1, keepdims=True)          # (nb, 1)  ||z||^2
    # Channel reduction on lane-dense (P-wide) vregs.
    # TODO(synk): at production C~256 consider ones(1,C) @ xsq on the MXU instead.
    sq = jnp.sum(xx * xx, axis=1)                          # (nb, P)  sum_c x^2
    # k x k window sum as one MXU matmul; fp32 contract precision so it matches
    # the f32 reference (default precision may use bf16 passes).
    win = jnp.dot(sq, wmat, preferred_element_type=jnp.float32,
                  precision=jax.lax.Precision.HIGHEST)     # (nb, Q)

    if mode == 'cosine':
        denom = jnp.sqrt(sz) * jnp.sqrt(win) + 1e-32       # reference epsilon form
        res = (o / denom + 1.0) * 0.5
    else:  # 'euclidean'
        res = jnp.sqrt(jnp.maximum(o + sz + win, 1e-32))
    y_ref[:, 0, :] = res.astype(y_ref.dtype)               # single lane-dense store


# ----------------------------- wrappers -----------------------------

@functools.lru_cache(maxsize=None)
def _is_dual_tensorcore():
    try:
        kind = jax.devices()[0].device_kind.lower()
    except Exception:
        return False
    return "v7" in kind          # v7x has 2 TensorCores per chip


def _batch_splits(n):
    """2-way 'parallel' batch grid only where there is a second TensorCore."""
    return 2 if (_is_dual_tensorcore() and n >= 2 and n % 2 == 0) else 1


@functools.lru_cache(maxsize=None)
def _window_matrix(hx, wx, ho, wo, k):
    """0/1 matrix W (P, Q): win_flat = sq_flat @ W  == VALID k x k window sum."""
    h = np.repeat(np.arange(hx), wx)
    w = np.tile(np.arange(wx), hx)                         # (P,)
    i = np.repeat(np.arange(ho), wo)
    j = np.tile(np.arange(wo), ho)                         # (Q,)
    m = ((h[:, None] >= i[None, :]) & (h[:, None] < i[None, :] + k)
         & (w[:, None] >= j[None, :]) & (w[:, None] < j[None, :] + k))
    return m.astype(np.float32)


@jax.jit
def _run_bn(out, gamma, beta):
    # TODO(synk): the response map is tiny (<1 MiB); if it ever outgrows VMEM,
    # tile this with an 'arbitrary' stats axis instead of a single block.
    n = out.shape[0]
    v2 = out.reshape(n, out.size // n)                     # contiguous, lane-dense
    y2 = pl.pallas_call(
        functools.partial(_bn_kernel, count=out.size),
        out_shape=jax.ShapeDtypeStruct(v2.shape, v2.dtype),
        in_specs=[pl.BlockSpec(memory_space=pltpu.MemorySpace.VMEM),
                  pl.BlockSpec(memory_space=pltpu.MemorySpace.SMEM),
                  pl.BlockSpec(memory_space=pltpu.MemorySpace.SMEM)],
        out_specs=pl.BlockSpec(memory_space=pltpu.MemorySpace.VMEM),
    )(v2, gamma, beta)
    return y2.reshape(out.shape)


@jax.jit
def _run_linear(out, w, b):
    n = out.shape[0]
    v2 = out.reshape(n, out.size // n)
    y2 = pl.pallas_call(
        _affine_kernel,
        out_shape=jax.ShapeDtypeStruct(v2.shape, v2.dtype),
        in_specs=[pl.BlockSpec(memory_space=pltpu.MemorySpace.VMEM),
                  pl.BlockSpec(memory_space=pltpu.MemorySpace.SMEM),
                  pl.BlockSpec(memory_space=pltpu.MemorySpace.SMEM)],
        out_specs=pl.BlockSpec(memory_space=pltpu.MemorySpace.VMEM),
    )(v2, w, b)
    return y2.reshape(out.shape)


@functools.partial(jax.jit, static_argnames=("mode", "splits"))
def _run_norm(out, z, x, *, mode, splits):
    N, _, Ho, Wo = out.shape
    _, C, k, _ = z.shape
    _, _, Hx, Wx = x.shape
    assert Ho == Hx - k + 1 and Wo == Wx - k + 1
    P, Q, Kz = Hx * Wx, Ho * Wo, C * k * k

    # Lane-dense views (all contiguous reshapes: no data movement).
    o3 = out.reshape(N, 1, Q)
    z3 = z.reshape(N, 1, Kz)
    x3 = x.reshape(N, C, P)
    wmat = jnp.asarray(_window_matrix(Hx, Wx, Ho, Wo, k))  # (P, Q) constant

    # TODO(synk): at production sizes (C~256, Hx~22) cast x to bf16 for the DMA
    # and upcast in-kernel on bandwidth-limited v5e/v6e.
    nb = N // splits
    kern = functools.partial(_norm_kernel, mode=mode)
    y3 = pl.pallas_call(
        kern,
        out_shape=jax.ShapeDtypeStruct((N, 1, Q), out.dtype),
        grid=(splits,),
        in_specs=[pl.BlockSpec((nb, 1, Q), lambda i: (i, 0, 0)),
                  pl.BlockSpec((nb, 1, Kz), lambda i: (i, 0, 0)),
                  pl.BlockSpec((nb, C, P), lambda i: (i, 0, 0)),
                  pl.BlockSpec((P, Q), lambda i: (0, 0))],
        out_specs=pl.BlockSpec((nb, 1, Q), lambda i: (i, 0, 0)),
        compiler_params=pltpu.CompilerParams(dimension_semantics=("parallel",)),
    )(o3, z3, x3, wmat)
    return y3.reshape(out.shape)


class Adjust2d:
    """JAX/Pallas port of lib/models/submodules.py::Adjust2d (forward pass)."""

    def __init__(self, norm='bn'):
        assert norm in [None, 'bn', 'cosine', 'euclidean', 'linear']
        self.norm = norm
        if norm == 'bn':
            # BatchNorm2d(1): weight filled with 1, bias zeroed (per _initialize_weights).
            self.gamma = jnp.ones((1,), jnp.float32)
            self.beta = jnp.zeros((1,), jnp.float32)
        elif norm == 'linear':
            # Conv2d(1,1,1,bias=True): weight filled with 0.001, bias zeroed.
            self.weight = jnp.full((1,), 0.001, jnp.float32)
            self.bias = jnp.zeros((1,), jnp.float32)

    def __call__(self, out, z=None, x=None):
        if self.norm == 'bn':
            return _run_bn(out, self.gamma, self.beta)
        if self.norm == 'linear':
            return _run_linear(out, self.weight, self.bias)
        if self.norm in ('cosine', 'euclidean'):
            return _run_norm(out, z, x, mode=self.norm,
                             splits=_batch_splits(out.shape[0]))
        return out  # norm == None: identity


# ----------------------------- pure-JAX reference -----------------------------

def _ref(norm, out, z=None, x=None, gamma=None, beta=None, w=None, b=None):
    if norm == 'bn':
        mean = jnp.mean(out)
        var = jnp.mean((out - mean) ** 2)
        return (out - mean) / jnp.sqrt(var + 1e-5) * gamma[0] + beta[0]
    if norm == 'linear':
        return out * w[0] + b[0]
    if norm in ('cosine', 'euclidean'):
        n, k = out.shape[0], z.shape[-1]
        sqr_z = jnp.sum(z.reshape(n, -1) ** 2, axis=1).reshape(n, 1, 1, 1)
        xx = jnp.sum(x ** 2, axis=1, keepdims=True)
        win = lax.reduce_window(xx, 0.0, lax.add,
                                (1, 1, k, k), (1, 1, 1, 1), 'VALID')
        if norm == 'cosine':
            o = out / (jnp.sqrt(sqr_z) * jnp.sqrt(win) + 1e-32)
            return (o + 1.0) / 2.0
        return jnp.sqrt(jnp.clip(out + sqr_z + win, 1e-32))
    return out


# ----------------------------- main -----------------------------

if __name__ == "__main__":
    key = jax.random.PRNGKey(0)
    k0, k1, k2 = jax.random.split(key, 3)

    N, C, Hx, Wx, K = 2, 4, 16, 16, 8
    Ho, Wo = Hx - K + 1, Wx - K + 1      # 9 x 9

    out = jax.random.normal(k0, (N, 1, Ho, Wo), jnp.float32)
    z = jax.random.normal(k1, (N, C, K, K), jnp.float32)
    x = jax.random.normal(k2, (N, C, Hx, Wx), jnp.float32)

    for norm in ['bn', 'linear', 'cosine', 'euclidean', None]:
        mod = Adjust2d(norm)
        y = jax.block_until_ready(mod(out, z, x))
        if norm == 'bn':
            ref = _ref('bn', out, gamma=mod.gamma, beta=mod.beta)
        elif norm == 'linear':
            ref = _ref('linear', out, w=mod.weight, b=mod.bias)
        else:
            ref = _ref(norm, out, z, x)
        np.testing.assert_allclose(np.asarray(y), np.asarray(ref), rtol=1e-5, atol=1e-5)

    print("KERNEL_OK")
</pallas_src>

<mosaic_0001>
module attributes {stable_mosaic.version = 11 : i64} {
  func.func @_bn_kernel(%arg0: memref<2x81xf32, #tpu.memory_space<vmem>>, %arg1: memref<1xf32, #tpu.memory_space<smem>>, %arg2: memref<1xf32, #tpu.memory_space<smem>>, %arg3: memref<2x81xf32, #tpu.memory_space<vmem>>) attributes {dimension_semantics = [], scalar_prefetch = 0 : i64, scratch_operands = 0 : i64, tpu.core_type = #tpu.core_type<tc>} {
    %c0 = arith.constant 0 : index
    %c0_0 = arith.constant 0 : index
    %0 = vector.load %arg0[%c0, %c0_0] : memref<2x81xf32, #tpu.memory_space<vmem>>, vector<2x81xf32>
    %1 = vector.shape_cast %0 : vector<2x81xf32> to vector<1x2x81xf32>
    %cst = arith.constant dense<0.000000e+00> : vector<1xf32>
    %2 = vector.multi_reduction <add>, %1, %cst [1, 2] : vector<1x2x81xf32> to vector<1xf32>
    %3 = vector.shape_cast %2 : vector<1xf32> to vector<1x1x1xf32>
    %4 = vector.extract %3[0, 0, 0] : f32 from vector<1x1x1xf32>
    %cst_1 = arith.constant 0.00617283955 : f32
    %5 = arith.mulf %4, %cst_1 : f32
    %6 = vector.broadcast %5 : f32 to vector<2x81xf32>
    %7 = arith.subf %0, %6 : vector<2x81xf32>
    %8 = arith.mulf %7, %7 : vector<2x81xf32>
    %9 = vector.shape_cast %8 : vector<2x81xf32> to vector<1x2x81xf32>
    %cst_2 = arith.constant dense<0.000000e+00> : vector<1xf32>
    %10 = vector.multi_reduction <add>, %9, %cst_2 [1, 2] : vector<1x2x81xf32> to vector<1xf32>
    %11 = vector.shape_cast %10 : vector<1xf32> to vector<1x1x1xf32>
    %12 = vector.extract %11[0, 0, 0] : f32 from vector<1x1x1xf32>
    %cst_3 = arith.constant 0.00617283955 : f32
    %13 = arith.mulf %12, %cst_3 : f32
    %c0_4 = arith.constant 0 : index
    %14 = memref.load %arg1[%c0_4] : memref<1xf32, #tpu.memory_space<smem>>
    %cst_5 = arith.constant 9.99999974E-6 : f32
    %15 = arith.addf %13, %cst_5 : f32
    %16 = math.sqrt %15 : f32
    %17 = arith.divf %14, %16 : f32
    %18 = vector.broadcast %17 : f32 to vector<2x81xf32>
    %19 = arith.mulf %7, %18 : vector<2x81xf32>
    %c0_6 = arith.constant 0 : index
    %20 = memref.load %arg2[%c0_6] : memref<1xf32, #tpu.memory_space<smem>>
    %21 = vector.broadcast %20 : f32 to vector<2x81xf32>
    %22 = arith.addf %19, %21 : vector<2x81xf32>
    %c0_7 = arith.constant 0 : index
    %c0_8 = arith.constant 0 : index
    %23 = vector.load %arg3[%c0_7, %c0_8] : memref<2x81xf32, #tpu.memory_space<vmem>>, vector<2x81xf32>
    tpu.vector_store %arg3[%c0_7, %c0_8], %22 {strides = array<i32>} : memref<2x81xf32, #tpu.memory_space<vmem>>, vector<2x81xf32>,
    return
  }
}

</mosaic_0001>

<bundles_post_ra>
// kernel: _run_bn.1
= control target key start
LH: loop header
LB: loop body
LE: loop exit
PB: predicated region body
PF: predicated region fallthrough
CT: control target
= control target key end

     0   :  { %vm17_vm0 = vcmask 656384   ;;  %s133_s0 = inlined_call_operand.vmem [shape: f32[2,81], index: 0, kind: input, shape index: {}]   ;;  %s134_s1 = inlined_call_operand.<no memory space> [shape: f32[1], index: 1, kind: input, shape index: {}]   ;;  %s135_s2 = inlined_call_operand.<no memory space> [shape: f32[1], index: 2, kind: input, shape index: {}]   ;;  %s136_s3 = inlined_call_operand.vmem [shape: f32[2,81], index: 3, kind: output, shape index: {}]  }
   0x1   :  { %v16_v0 = vld [vmem:[%s133_s0] sm:$0x3]  ;;  %v79_v43 = vstv %s135_s2 }
   0x2   :  { %v18_v1 = vsel %vm17_vm0, %v16_v0, 0.0 }
   0x3   :  { %19 = vadd.xlane.f32.xlu0 %v18_v1 }
  0x76   :  { %v20_v2 = vpop.xlane.xlu0 %19 }
  0x77   :  { %v21_v3 = vrot.slane %v20_v2, 4 }
  0x79   :  { %v22_v4 = vadd.f32 %v21_v3, %v20_v2 }
  0x7b   :  { %v23_v5 = vrot.slane %v22_v4, 2 }
  0x7d   :  { %v24_v6 = vadd.f32 %v23_v5, %v22_v4 }
  0x7f   :  { %v25_v7 = vrot.slane %v24_v6, 1 }
  0x81   :  { %v26_v8 = vadd.f32 %v25_v7, %v24_v6 }
  0x83   :  { %86 = vpush %v26_v8 }
  0xb4   :  { %s87_s14 = spop %86 }
  0xb5   :  { %s28_s15 = smul.f32 0.0061728396, %s87_s14 }
  0xb7   :  { %v29_v9 = vstv %s28_s15 }
  0xb8   :  { %v30_v10 = vsub.f32 %v16_v0, %v29_v9 }
  0xba   :  { %v31_v11 = vmul.f32 %v30_v10, %v30_v10 }
  0xbc   :  { %v32_v12 = vsel %vm17_vm0, %v31_v11, 0.0 }
  0xbd   :  { %33 = vadd.xlane.f32.xlu0 %v32_v12 }
 0x130   :  { %v34_v13 = vpop.xlane.xlu0 %33 }
 0x131   :  { %v35_v14 = vrot.slane %v34_v13, 4 }
 0x133   :  { %v36_v15 = vadd.f32 %v35_v14, %v34_v13 }
 0x135   :  { %v37_v16 = vrot.slane %v36_v15, 2 }
 0x137   :  { %v38_v17 = vadd.f32 %v37_v16, %v36_v15 }
 0x139   :  { %v39_v18 = vrot.slane %v38_v17, 1 }
 0x13b   :  { %v40_v19 = vadd.f32 %v39_v18, %v38_v17 }
 0x13d   :  { %88 = vpush %v40_v19 }
 0x16e   :  { %s89_s0 = spop %88 }
 0x16f   :  { %s42_s16 = smul.f32 0.0061728396, %s89_s0 }
 0x171   :  { %s44_s17 = sadd.f32 1e-05, %s42_s16 }
 0x173   :  { %v45_v20 = vstv %s44_s17 }
 0x174   :  { %94 = vrsqrt.f32 %v45_v20  ;;  %vm53_vm1 = vcmp.eq.f32.partialorder %v45_v20, inf  ;;  %v56_v28 = vand.u32 2147483648, %v45_v20  ;;  %vm55_vm2 = vcmp.eq.f32.partialorder %v45_v20, 0.0 }
 0x17a   :  { %v95_v21 = vpop.eup %94 }
 0x17b   :  { %v47_v22 = vmul.f32 %v95_v21, %v45_v20 }
 0x17d   :  { %v48_v23 = vmul.f32 %v95_v21, %v47_v22 }
 0x17f   :  { %v49_v24 = vmul.f32 0.5, %v48_v23 }
 0x181   :  { %v50_v25 = vsub.f32 1.5, %v49_v24 }
 0x183   :  { %v51_v26 = vmul.f32 %v95_v21, %v50_v25 }
 0x185   :  { %v52_v27 = vmul.f32 %v51_v26, %v45_v20 }
 0x187   :  { %v54_v29 = vsel %vm53_vm1, %v45_v20, %v52_v27 }
 0x188   :  { %v57_v30 = vsel %vm55_vm2, %v56_v28, %v54_v29 }
 0x189   :  { %90 = vpush %v57_v30 }
 0x1ba   :  { %s91_s18 = spop %90 }
 0x1bb   :  { %v59_v31 = vstv %s91_s18 }
 0x1bc   :  { %96 = vrcp.f32 %v59_v31  ;;  %v71_v35 = vand.u32 2147483648, %v59_v31  ;;  %v69_v37 = vand.u32 2147483647, %v59_v31  ;;  %vm65_vm4 = vweird.f32 %v59_v31 }
 0x1be   :  { %v72_v39 = vor.u32 1.1754944e-38, %v71_v35  ;;  %vm70_vm6 = vcmp.eq.f32.partialorder %v69_v37, 8.507059e+37 }
 0x1c2   :  { %v97_v32 = vpop.eup %96 }
 0x1c3   :  { %v61_v33 = vmul.f32 %v97_v32, %v59_v31  ;;  %vm66_vm3 = vweird.f32 %v97_v32 }
 0x1c4   :  { %vm67_vm5 = vmor %vm65_vm4, %vm66_vm3 }
 0x1c5   :  { %v62_v34 = vsub.f32 1.0, %v61_v33 }
 0x1c7   :  { %v63_v36 = vmul.f32 %v97_v32, %v62_v34 }
 0x1c9   :  { %v64_v38 = vadd.f32 %v97_v32, %v63_v36 }
 0x1cb   :  { %v68_v40 = vsel %vm67_vm5, %v97_v32, %v64_v38 }
 0x1cc   :  { %v73_v41 = vsel %vm70_vm6, %v72_v39, %v68_v40 }
 0x1cd   :  { %92 = vpush %v73_v41 }
 0x1fe   :  { %s93_s19 = spop %92 }
 0x1ff   :  { %s75_s22 = smul.f32 %s93_s19, %s134_s1 }
 0x201   :  { %v76_v42 = vstv %s75_s22 }
 0x202   :  { %v77_v44 = vmul.f32 %v76_v42, %v30_v10 }
 0x204   :  { %v80_v45 = vadd.f32 %v79_v43, %v77_v44 }
 0x206   :  { %81 = vst.msk [vmem:[%s136_s3] sm:$0x3] %vm17_vm0, %v80_v45 }

</bundles_post_ra>
